<compile_context>
chip_gen: v5e
topology: v5e:2x2
jax: 0.10.0
libtpu: 0.0.40
codegen_flags: <defaults>
</compile_context>

<pallas_src>
import jax
import jax.numpy as jnp
from jax.experimental import pallas as pl
from jax.experimental.pallas import tpu as pltpu


# ----------------------------------------------------------------------------
# Fused ChannelAttention kernel
# ----------------------------------------------------------------------------
def _channel_attention_kernel(x_ref, w1_ref, w2_ref, o_ref):
    # x_ref : (TB, C, HW)  input slab, HW on the lane axis (any float dtype)
    # w1_ref: (Cr, C) f32  fc1 weight (contract over C)
    # w2_ref: (Cr, C) f32  fc2 weight, pre-transposed (contract over Cr)
    # o_ref : (1, TB, C) f32  sigmoid(channel attention), C on the lane axis
    x = x_ref[...].astype(jnp.float32)
    tb, _, hw = x.shape
    w1 = w1_ref[...]

    # ---- max pool (lane-axis XLU reduction) + fc1 ---------------------------
    mx = jnp.max(x, axis=-1)                                        # (TB, C)
    h_max = jax.lax.dot_general(
        mx, w1, (((1,), (1,)), ((), ())),
        preferred_element_type=jnp.float32)                         # (TB, Cr)

    # ---- avg pool via MXU: fc1 commutes with the spatial mean ---------------
    # h_avg[b, r] = (1/HW) * sum_hw (w1 @ x[b])[r, hw]
    # Only (TB, Cr, HW) is lane-reduced on the XLU instead of (TB, C, HW).
    w1b = jnp.broadcast_to(w1, (tb,) + w1.shape)                    # (TB, Cr, C)
    wx = jax.lax.dot_general(
        w1b, x, (((2,), (1,)), ((0,), (0,))),
        preferred_element_type=jnp.float32)                         # (TB, Cr, HW)
    h_avg = jnp.sum(wx, axis=-1) * (1.0 / hw)                       # (TB, Cr)

    # ---- shared MLP: one fc2 GEMM over stacked [avg rows ; max rows] --------
    h = jnp.concatenate([h_avg, h_max], axis=0)                     # (2*TB, Cr)
    h = jnp.maximum(h, 0.0)                                         # ReLU
    y = jnp.dot(h, w2_ref[...],
                preferred_element_type=jnp.float32)                 # (2*TB, C)

    # avg branch + max branch (splits on vreg boundaries when TB % 8 == 0),
    # sigmoid on the EUP, lane-dense store.
    out = jax.nn.sigmoid(y[:tb] + y[tb:])                           # (TB, C)
    o_ref[...] = out.reshape(o_ref.shape)                           # (1, TB, C)


def _pick_block_batch(N, C, HW, vmem_budget_bytes=12 << 20):
    """Largest divisor of N whose double-buffered x block fits the VMEM budget.

    Prefers (a) keeping >= 2 grid steps (v7x megacore sharding), then
    (b) multiples of 8 (vreg-aligned [avg ; max] stacking), then (c) size.
    """
    per_elem = C * HW * 4                       # f32 bytes per batch element
    cap = max(1, vmem_budget_bytes // (2 * per_elem))   # 2x: double-buffered
    divisors = [d for d in range(1, N + 1) if N % d == 0 and d <= cap]
    if not divisors:
        divisors = [1]
    return max(divisors, key=lambda d: (N // d >= 2, d % 8 == 0, d))


def prepare_channel_attention_params(fc1_w, fc2_w):
    """One-time prep: PyTorch 1x1-Conv weights -> lane-dense (Cr, C) slabs."""
    Cr, C = fc1_w.shape[0], fc1_w.shape[1]
    w1 = jnp.asarray(fc1_w).reshape(Cr, C).astype(jnp.float32)     # fc1: (Cr, C)
    w2 = jnp.asarray(fc2_w).reshape(C, Cr).T.astype(jnp.float32)   # fc2: (Cr, C)
    return w1, w2


def channel_attention(x, w1, w2, *, block_batch=None, vmem_budget_bytes=12 << 20):
    """Pallas ChannelAttention forward.

    x  : (N, C, H, W) float (f32 or bf16)
    w1 : (Cr, C) f32   prepared fc1 weight (see prepare_channel_attention_params)
    w2 : (Cr, C) f32   prepared fc2 weight (pre-transposed)
    returns (N, C, 1, 1) f32
    """
    N, C, H, W = x.shape
    Cr = w1.shape[0]
    HW = H * W

    # Metadata-only reshape (NCHW is already contiguous over H*W).
    x3 = x.reshape(N, C, HW)

    TB = block_batch if block_batch is not None else _pick_block_batch(
        N, C, HW, vmem_budget_bytes)
    assert N % TB == 0, (N, TB)
    grid = (N // TB,)

    cost = pl.CostEstimate(
        flops=int(2 * N * Cr * C * HW          # avg-branch batched GEMM
                  + 2 * N * Cr * C             # fc1 on max pool
                  + 4 * N * Cr * C             # fc2 on stacked rows
                  + 2 * N * C * HW),           # pooling reductions
        transcendentals=int(N * C),            # sigmoid
        bytes_accessed=int(x3.size * x3.dtype.itemsize
                           + (w1.size + w2.size) * 4
                           + N * C * 4),
    )

    out = pl.pallas_call(
        _channel_attention_kernel,
        grid=grid,
        in_specs=[
            pl.BlockSpec((TB, C, HW), lambda n: (n, 0, 0)),
            pl.BlockSpec((Cr, C), lambda n: (0, 0)),
            pl.BlockSpec((Cr, C), lambda n: (0, 0)),
        ],
        out_specs=pl.BlockSpec((1, TB, C), lambda n: (n, 0, 0)),
        out_shape=jax.ShapeDtypeStruct((N // TB, TB, C), jnp.float32),
        compiler_params=pltpu.CompilerParams(
            dimension_semantics=("parallel",)),
        cost_estimate=cost,
    )(x3, w1, w2)

    # (N//TB, TB, C) -> (N, C, 1, 1) to match the PyTorch module's output shape.
    return out.reshape(N, C, 1, 1)


# ----------------------------------------------------------------------------
# Pure-JAX reference (for correctness check)
# ----------------------------------------------------------------------------
def channel_attention_ref(x, fc1_w, fc2_w):
    N, C, H, W = x.shape
    Cr = fc1_w.shape[0]
    w1 = fc1_w.reshape(Cr, C)
    w2 = fc2_w.reshape(C, Cr)
    avg = jnp.mean(x.astype(jnp.float32), axis=(2, 3))   # (N, C)
    mx = jnp.max(x.astype(jnp.float32), axis=(2, 3))     # (N, C)

    def fc(v):
        h = jnp.maximum(v @ w1.T, 0.0)
        return h @ w2.T

    out = jax.nn.sigmoid(fc(avg) + fc(mx))
    return out.reshape(N, C, 1, 1)


# ----------------------------------------------------------------------------
# Main
# ----------------------------------------------------------------------------
if __name__ == "__main__":
    key = jax.random.PRNGKey(0)
    configs = [
        (2, 128, 16, 16),   # tiny batch, lane-dense C=128 (TB=1, grid=2)
        (16, 64, 8, 8),     # larger batch -> exercises TB batching (TB=8, grid=2)
    ]
    fwd = jax.jit(channel_attention)

    for (N, C, H, W) in configs:
        assert C % 16 == 0                    # PyTorch module hardcodes // 16
        Cr = C // 16

        key, kx, k1, k2 = jax.random.split(key, 4)
        x = jax.random.normal(kx, (N, C, H, W), jnp.float32)
        fc1_w = jax.random.normal(k1, (Cr, C, 1, 1), jnp.float32) * (1.0 / (C ** 0.5))
        fc2_w = jax.random.normal(k2, (C, Cr, 1, 1), jnp.float32) * (1.0 / (Cr ** 0.5))

        # One-time parameter prep (kept outside the jitted per-call path).
        w1, w2 = prepare_channel_attention_params(fc1_w, fc2_w)

        out = fwd(x, w1, w2)
        jax.block_until_ready(out)

        ref = channel_attention_ref(x, fc1_w, fc2_w)
        jax.block_until_ready(ref)

        assert out.shape == (N, C, 1, 1)
        assert jnp.all(jnp.isfinite(out))
        assert jnp.allclose(out, ref, rtol=1e-3, atol=1e-3), (N, C, H, W)

    print("KERNEL_OK")
</pallas_src>

<mosaic_0001>
module attributes {stable_mosaic.version = 11 : i64} {
  func.func @_channel_attention_kernel(%arg0: i32, %arg1: memref<1x128x256xf32, #tpu.memory_space<vmem>>, %arg2: memref<8x128xf32, #tpu.memory_space<vmem>>, %arg3: memref<8x128xf32, #tpu.memory_space<vmem>>, %arg4: memref<1x1x128xf32, #tpu.memory_space<vmem>>) attributes {dimension_semantics = [#tpu.dimension_semantics<parallel>], iteration_bounds = array<i64: 2>, scalar_prefetch = 0 : i64, scratch_operands = 0 : i64, tpu.core_type = #tpu.core_type<tc>, window_params = [{transform_indices = @transform_0, window_bounds = array<i64: 1, 128, 256>}, {pipeline_mode = #tpu.pipeline_mode<synchronous>, transform_indices = @transform_1, window_bounds = array<i64: 8, 128>}, {pipeline_mode = #tpu.pipeline_mode<synchronous>, transform_indices = @transform_2, window_bounds = array<i64: 8, 128>}, {transform_indices = @transform_3, window_bounds = array<i64: 1, 1, 128>}]} {
    %c0 = arith.constant 0 : index
    %c0_0 = arith.constant 0 : index
    %c0_1 = arith.constant 0 : index
    %0 = vector.load %arg1[%c0, %c0_0, %c0_1] : memref<1x128x256xf32, #tpu.memory_space<vmem>>, vector<1x128x256xf32>
    %c0_2 = arith.constant 0 : index
    %c0_3 = arith.constant 0 : index
    %1 = vector.load %arg2[%c0_2, %c0_3] : memref<8x128xf32, #tpu.memory_space<vmem>>, vector<8x128xf32>
    %cst = arith.constant dense<0xFF800000> : vector<1x128xf32>
    %2 = vector.multi_reduction <maximumf>, %0, %cst [2] : vector<1x128x256xf32> to vector<1x128xf32>
    %cst_4 = arith.constant dense<0.000000e+00> : vector<1x8xf32>
    %3 = tpu.matmul %2, %1, %cst_4 {dimension_numbers = #tpu.dot_dimension_numbers<[1], [1], [0], [0], [0, 0, 1, 0], [], []>} : vector<1x128xf32>, vector<8x128xf32>, vector<1x8xf32> -> vector<1x8xf32>
    %4 = vector.shape_cast %1 : vector<8x128xf32> to vector<1x8x128xf32>
    %cst_5 = arith.constant dense<0.000000e+00> : vector<1x8x256xf32>
    %5 = tpu.matmul %4, %0, %cst_5 {dimension_numbers = #tpu.dot_dimension_numbers<[2], [1], [1], [2], [0, 0, 0, 1, 1, 2], [0], [0]>} : vector<1x8x128xf32>, vector<1x128x256xf32>, vector<1x8x256xf32> -> vector<1x8x256xf32>
    %cst_6 = arith.constant dense<0.000000e+00> : vector<1x8xf32>
    %6 = vector.multi_reduction <add>, %5, %cst_6 [2] : vector<1x8x256xf32> to vector<1x8xf32>
    %cst_7 = arith.constant 3.906250e-03 : f32
    %7 = vector.broadcast %cst_7 : f32 to vector<1x8xf32>
    %8 = arith.mulf %6, %7 : vector<1x8xf32>
    %9 = tpu.concatenate %8, %3 in 0 : vector<1x8xf32>, vector<1x8xf32> -> vector<2x8xf32>
    %cst_8 = arith.constant 0.000000e+00 : f32
    %10 = vector.broadcast %cst_8 : f32 to vector<2x8xf32>
    %11 = arith.maximumf %9, %10 : vector<2x8xf32>
    %c0_9 = arith.constant 0 : index
    %c0_10 = arith.constant 0 : index
    %12 = vector.load %arg3[%c0_9, %c0_10] : memref<8x128xf32, #tpu.memory_space<vmem>>, vector<8x128xf32>
    %cst_11 = arith.constant dense<0.000000e+00> : vector<2x128xf32>
    %13 = tpu.matmul %11, %12, %cst_11 {dimension_numbers = #tpu.dot_dimension_numbers<[1], [0], [0], [1], [0, 0, 1, 1], [], []>} : vector<2x8xf32>, vector<8x128xf32>, vector<2x128xf32> -> vector<2x128xf32>
    %14 = vector.extract_strided_slice %13 {offsets = [0, 0], sizes = [1, 128], strides = [1, 1]} : vector<2x128xf32> to vector<1x128xf32>
    %15 = vector.extract_strided_slice %13 {offsets = [1, 0], sizes = [1, 128], strides = [1, 1]} : vector<2x128xf32> to vector<1x128xf32>
    %16 = arith.addf %14, %15 : vector<1x128xf32>
    %17 = arith.negf %16 : vector<1x128xf32>
    %18 = math.exp %17 : vector<1x128xf32>
    %cst_12 = arith.constant 1.000000e+00 : f32
    %19 = vector.broadcast %cst_12 : f32 to vector<1x128xf32>
    %20 = arith.addf %19, %18 : vector<1x128xf32>
    %21 = arith.divf %19, %20 : vector<1x128xf32>
    %22 = vector.shape_cast %21 : vector<1x128xf32> to vector<1x1x128xf32>
    %c0_13 = arith.constant 0 : index
    %c0_14 = arith.constant 0 : index
    %c0_15 = arith.constant 0 : index
    %23 = vector.load %arg4[%c0_13, %c0_14, %c0_15] : memref<1x1x128xf32, #tpu.memory_space<vmem>>, vector<1x1x128xf32>
    tpu.vector_store %arg4[%c0_13, %c0_14, %c0_15], %22 {strides = array<i32>} : memref<1x1x128xf32, #tpu.memory_space<vmem>>, vector<1x1x128xf32>,
    return
  }
  func.func @transform_0(%arg0: i32) -> (i32, i32, i32) {
    %c0_i32 = arith.constant 0 : i32
    %c0_i32_0 = arith.constant 0 : i32
    %c0_i32_1 = arith.constant 0 : i32
    return %arg0, %c0_i32, %c0_i32_0 : i32, i32, i32
  }
  func.func @transform_1(%arg0: i32) -> (i32, i32) {
    %c0_i32 = arith.constant 0 : i32
    %c0_i32_0 = arith.constant 0 : i32
    %c0_i32_1 = arith.constant 0 : i32
    return %c0_i32, %c0_i32_0 : i32, i32
  }
  func.func @transform_2(%arg0: i32) -> (i32, i32) {
    %c0_i32 = arith.constant 0 : i32
    %c0_i32_0 = arith.constant 0 : i32
    %c0_i32_1 = arith.constant 0 : i32
    return %c0_i32, %c0_i32_0 : i32, i32
  }
  func.func @transform_3(%arg0: i32) -> (i32, i32, i32) {
    %c0_i32 = arith.constant 0 : i32
    %c0_i32_0 = arith.constant 0 : i32
    %c0_i32_1 = arith.constant 0 : i32
    return %arg0, %c0_i32, %c0_i32_0 : i32, i32, i32
  }
}

</mosaic_0001>

<bundles_post_ra>
// kernel: channel_attention.1
= control target key start
LH: loop header
LB: loop body
LE: loop exit
PB: predicated region body
PF: predicated region fallthrough
CT: control target
= control target key end

     0   :  { %8 = vsyncpa [#allocation3], 0  ;;  %s861_s0 = inlined_call_operand.vmem [shape: f32[2,128,256], index: 0, kind: input, shape index: {}]   ;;  %s862_s1 = inlined_call_operand.vmem [shape: f32[8,128], index: 1, kind: input, shape index: {}]   ;;  %s863_s2 = inlined_call_operand.vmem [shape: f32[8,128], index: 2, kind: input, shape index: {}]   ;;  %s864_s3 = inlined_call_operand.hbm [shape: f32[2,1,128], index: 3, kind: output, shape index: {}]  }
   0x1   :  { %10 = vsyncpa [#allocation3 + $0x1], 0  ;;  %s657_s12 = smov 0   ;;  %s659_s13 = smov 0  }
   0x2   :  { %s661_s14 = smov 0   ;;  %s663_s15 = smov 0  }
   0x3 LB: > { %s678_s16 = sadd.s32 4294967295, %s635_s15   ;;  %s519_s17 = sadd.s32 4294967294, %s635_s15   ;;  %s635_s15 = sphi %s663_s15, %s870_s15   ;;  %s631_s14 = sphi %s661_s14, %s869_s14   ;;  %s627_s13 = sphi %s659_s13, %s868_s13   ;;  %s623_s12 = sphi %s657_s12, %s867_s12  }
   0x4   : > { %s682_s18 = sadd.s32 1, %s635_s15   ;;  %s91_s19 = sadd.s32 1, %s631_s14 }
   0x5   : > { %s88_s20 = ssub.s32 %s635_s15, %s682_s18  ;;  %p101_p0 = scmp.ne.s32.totalorder %s631_s14, %s627_s13 }
   0x6   : > { %p89_p1 = scmp.eq.s32.totalorder %s88_s20, 0  ;;  %p102_p2 = scmp.eq.s32.totalorder %s678_s16, 1 }
   0x7   : > { %p107_p3 = scmp.ne.s32.totalorder %s627_s13, %s623_s12  ;;  %p108_p4 = scmp.eq.s32.totalorder %s519_s17, 1 }
   0x8   : > { %s693_s21 = scalar_select %p89_p1, %s631_s14, %s91_s19  }
   0x9   : > { %p695_p5 = por %p102_p2, %p101_p0  ;;  %p699_p6 = por %p108_p4, %p107_p3 }
   0xa   : > { %p522_p7 = scmp.ge.s32.totalorder %s635_s15, 1  ;;  %p140_p8 = scmp.lt.s32.totalorder %s635_s15, 3 }
   0xc   : > { %p141_p9 = pnand %p522_p7, %p140_p8 }
   0xd   : > { %p163_p10 = scmp.lt.s32.totalorder (!%p141_p9), %s678_s16, 1  ;;  %s161_s6 = sand.u32 (!%p141_p9), 1, %s627_s13  }
   0xe   : > { %144 = sbr.rel (%p141_p9) target bundleno = 483 (0x1e3), region = 32  ;;  %s460_s9 = scalar_lea.hbm (!%p141_p9), %s864_s3, %s678_s16 }
   0xf   : > { %s162_s10 = scalar_lea.vmem (!%p141_p9), [#allocation2], %s161_s6  ;;  %s464_s17 = sshll.u32 (!%p141_p9), %s460_s9, 4  ;;  %s465_s17 = int_to_ptr.hbm [resolvable:$true] %s464_s17 }
  0x10   : > { %s462_s11 = sshll.u32 (!%p141_p9), %s162_s10, 4  ;;  %s452_s19 = scalar_lea.sflag (!%p141_p9), [#allocation3], %s161_s6  ;;  %s463_s11 = int_to_ptr.vmem [resolvable:$true] %s462_s11 }
  0x11   : > { %s593_s26 = scalar_lea.hbm (!%p141_p9), %s864_s3, 2 }
  0x13   : > { %s164_s24 = scalar_select %p163_p10, %s678_s16, 1  ;;  %v200_v36 = vld [vmem:[%s862_s1] sm:$0xff]  ;;  %v265_v49 = vlaneseq  ;;  %vm270_vm0 = vcmask 130112   ;;  %vm274_vm1 = vcmask 195712   ;;  %vm278_vm2 = vcmask 261312  }
  0x14   : > { %344 = vmatpush.xpose.msra.mxu0 %v200_v36  ;;  %vm282_vm3 = vcmask 326912   ;;  %vm286_vm4 = vcmask 392512   ;;  %vm290_vm5 = vcmask 458112   ;;  %vm294_vm6 = vcmask 523712   ;;  %s587_s16 = sshra.s32 %s465_s17, 4  ;;  %s588_s16 = int_to_ptr.hbm [resolvable:$true] %s587_s16 }
  0x15   : > { %s529_s25 = sshll.u32 %s164_s24, 8  ;;  %v807_v53 = vand.u32 127, %v265_v49  ;;  %vm298_vm7 = vcmask 589312   ;;  %vm302_vm8 = vcmask 654912   ;;  %vm306_vm9 = vcmask 720512   ;;  %s589_s20 = scalar_lea.hbm %s588_s16, 1 }
  0x16   : > { %s710_s28 = scalar_lea.vmem %s861_s0, %s529_s25  ;;  %vm310_vm10 = vcmask 786112   ;;  %vm314_vm11 = vcmask 851712   ;;  %vm318_vm12 = vcmask 917312   ;;  %vm322_vm13 = vcmask 982912   ;;  %p590_p11 = scmp.ne.s32.totalorder %s588_s16, %s589_s20 }
  0x17   : > { %v713_v0 = vld [vmem:[%s710_s28] sm:$0xff]  ;;  %v716_v1 = vld [vmem:[%s710_s28 + $0x8] sm:$0xff]  ;;  %v727_v5 = vld [vmem:[%s710_s28 + $0xf8] sm:$0xff]  ;;  %v268_v54 = vadd.s32 4294967288, %v807_v53  ;;  %v272_v55 = vadd.s32 4294967280, %v807_v53  ;;  %v276_v56 = vadd.s32 4294967272, %v807_v53  ;;  %p594_p0 = scmp.lt.s32.totalorder %s588_s16, %s864_s3  ;;  %p595_p1 = scmp.lt.s32.totalorder %s593_s26, %s589_s20 }
  0x18   : > { %v719_v2 = vld [vmem:[%s710_s28 + $0x20] sm:$0xff]  ;;  %v201_v3 = vmax.f32 %v713_v0, %v716_v1  ;;  %v724_v4 = vld [vmem:[%s710_s28 + $0x28] sm:$0xff]  ;;  %369 = vmatpush.msra.mxu2 %v727_v5  ;;  %v744_v11 = vld [vmem:[%s710_s28 + $0xd8] sm:$0xff]  ;;  %vm326_vm14 = vcmask 1048512   ;;  %vm399_vm15 = vcmask 1040384   ;;  %p591_p12 = pnand %p590_p11, %p695_p5 }
  0x19   : > { %v730_v6 = vld [vmem:[%s710_s28 + $0x40] sm:$0xff]  ;;  %v207_v7 = vmax.f32 %v719_v2, %v724_v4  ;;  %v736_v8 = vld [vmem:[%s710_s28 + $0x48] sm:$0xff]  ;;  %v747_v12 = vld [vmem:[%s710_s28 + $0xf0] sm:$0xff]  ;;  %p596_p2 = por %p595_p1, %p594_p0 }
  0x1a   : > { %v739_v9 = vld [vmem:[%s710_s28 + $0xe8] sm:$0xff]  ;;  %202 = vmax.xlane.f32.xlu0 %v201_v3  ;;  %v213_v10 = vmax.f32 %v730_v6, %v736_v8  ;;  %v754_v14 = vld [vmem:[%s710_s28 + $0x10] sm:$0xff]  ;;  %v757_v15 = vld [vmem:[%s710_s28 + $0x18] sm:$0xff]  ;;  %349 = vmatpush.msra.mxu1 %v747_v12  ;;  %v246_v48 = vmax.f32 %v747_v12, %v727_v5  ;;  %v284_v3 = vadd.s32 4294967256, %v807_v53  ;;  %p592_p13 = pneg %p591_p12 }
  0x1b   : > { %208 = vmax.xlane.f32.xlu1 %v207_v7  ;;  %370 = vmatpush.msra.mxu2 %v739_v9  ;;  %v751_v13 = vld [vmem:[%s710_s28 + $0xc8] sm:$0xff]  ;;  %v174_v16 = vld [vmem:[%s710_s28 + $0x30] sm:$0xff]  ;;  %v175_v17 = vld [vmem:[%s710_s28 + $0x38] sm:$0xff]  ;;  %v204_v22 = vmax.f32 %v754_v14, %v757_v15 }
  0x1c   : > { %214 = vmax.xlane.f32.xlu2 %v213_v10  ;;  %v763_v18 = vld [vmem:[%s710_s28 + $0xe0] sm:$0xff]  ;;  %v178_v19 = vld [vmem:[%s710_s28 + $0x50] sm:$0xff]  ;;  %v179_v20 = vld [vmem:[%s710_s28 + $0x58] sm:$0xff]  ;;  %v210_v24 = vmax.f32 %v174_v16, %v175_v17  ;;  %p597_p3 = pnand %p596_p2, %p592_p13 }
  0x1d   : > { %371 = vmatpush.msra.mxu2 %v744_v11  ;;  %v769_v21 = vld [vmem:[%s710_s28 + $0xd0] sm:$0xff]  ;;  %350 = vmatpush.msra.mxu1 %v763_v18  ;;  %v191_v23 = vld [vmem:[%s710_s28 + $0xb8] sm:$0xff]  ;;  %v192_v25 = vld [vmem:[%s710_s28 + $0xc0] sm:$0xff]  ;;  %v216_v26 = vmax.f32 %v178_v19, %v179_v20  ;;  %v243_v47 = vmax.f32 %v763_v18, %v739_v9  ;;  %v292_v9 = vadd.s32 4294967240, %v807_v53 }
  0x1e   : > { %v189_v27 = vld [vmem:[%s710_s28 + $0xa8] sm:$0xff]  ;;  %v190_v28 = vld [vmem:[%s710_s28 + $0xb0] sm:$0xff]  ;;  %v187_v29 = vld [vmem:[%s710_s28 + $0x98] sm:$0xff]  ;;  %v237_v45 = vmax.f32 %v192_v25, %v751_v13  ;;  %v240_v46 = vmax.f32 %v769_v21, %v744_v11 }
  0x1f   : > { %372 = vmatpush.msra.mxu2 %v751_v13  ;;  %351 = vmatpush.msra.mxu1 %v769_v21  ;;  %v185_v30 = vld [vmem:[%s710_s28 + $0x88] sm:$0xff]  ;;  %v180_v31 = vld [vmem:[%s710_s28 + $0x60] sm:$0xff]  ;;  %v182_v34 = vld [vmem:[%s710_s28 + $0x70] sm:$0xff]  ;;  %v234_v44 = vmax.f32 %v190_v28, %v191_v23  ;;  %v304_v21 = vadd.s32 4294967216, %v807_v53 }
  0x20   : > { %v181_v32 = vld [vmem:[%s710_s28 + $0x68] sm:$0xff]  ;;  %v188_v33 = vld [vmem:[%s710_s28 + $0xa0] sm:$0xff]  ;;  %v183_v35 = vld [vmem:[%s710_s28 + $0x78] sm:$0xff] }
  0x21   : > { %373 = vmatpush.msra.mxu2 %v191_v23  ;;  %352 = vmatpush.msra.mxu1 %v192_v25  ;;  %v184_v37 = vld [vmem:[%s710_s28 + $0x80] sm:$0xff]  ;;  %v186_v38 = vld [vmem:[%s710_s28 + $0x90] sm:$0xff]  ;;  %v219_v39 = vmax.f32 %v180_v31, %v181_v32  ;;  %v222_v40 = vmax.f32 %v182_v34, %v183_v35  ;;  %v231_v43 = vmax.f32 %v188_v33, %v189_v27 }
  0x22   : > { %205 = vmax.xlane.f32.xlu0 %v204_v22  ;;  %v225_v41 = vmax.f32 %v184_v37, %v185_v30  ;;  %v228_v42 = vmax.f32 %v186_v38, %v187_v29 }
  0x23   : > { %211 = vmax.xlane.f32.xlu1 %v210_v24  ;;  %374 = vmatpush.msra.mxu2 %v189_v27 }
  0x24   : > { %217 = vmax.xlane.f32.xlu2 %v216_v26  ;;  %353 = vmatpush.msra.mxu1 %v190_v28  ;;  %v308_v26 = vadd.s32 4294967208, %v807_v53 }
  0x25   : > { %375 = vmatpush.msra.mxu2 %v187_v29 }
  0x26   : > { %354 = vmatpush.msra.mxu1 %v188_v33 }
  0x27   : > { %376 = vmatpush.msra.mxu2 %v185_v30  ;;  %v312_v30 = vadd.s32 4294967200, %v807_v53 }
  0x28   : > { %355 = vmatpush.msra.mxu1 %v186_v38 }
  0x29   : > { %377 = vmatpush.msra.mxu2 %v183_v35 }
  0x2a   : > { %220 = vmax.xlane.f32.xlu0 %v219_v39  ;;  %356 = vmatpush.msra.mxu1 %v184_v37  ;;  %v320_v37 = vadd.s32 4294967184, %v807_v53 }
  0x2b   : > { %223 = vmax.xlane.f32.xlu1 %v222_v40  ;;  %378 = vmatpush.msra.mxu2 %v181_v32  ;;  %v316_v32 = vadd.s32 4294967192, %v807_v53 }
  0x2c   : > { %226 = vmax.xlane.f32.xlu2 %v225_v41  ;;  %357 = vmatpush.msra.mxu1 %v182_v34 }
  0x2d   : > { %379 = vmatpush.msra.mxu2 %v179_v20 }
  0x2e   : > { %358 = vmatpush.msra.mxu1 %v180_v31 }
  0x2f   : > { %380 = vmatpush.msra.mxu2 %v736_v8 }
  0x30   : > { %359 = vmatpush.msra.mxu1 %v178_v19 }
  0x31   : > { %381 = vmatpush.msra.mxu2 %v175_v17  ;;  %v300_v17 = vadd.s32 4294967224, %v807_v53 }
  0x32   : > { %229 = vmax.xlane.f32.xlu0 %v228_v42  ;;  %360 = vmatpush.msra.mxu1 %v730_v6  ;;  %v324_v42 = vadd.s32 4294967176, %v807_v53 }
  0x33   : > { %232 = vmax.xlane.f32.xlu1 %v231_v43  ;;  %382 = vmatpush.msra.mxu2 %v724_v4  ;;  %v288_v4 = vadd.s32 4294967248, %v807_v53 }
  0x34   : > { %235 = vmax.xlane.f32.xlu2 %v234_v44  ;;  %361 = vmatpush.msra.mxu1 %v174_v16 }
  0x35   : > { %383 = vmatpush.msra.mxu2 %v757_v15 }
  0x36   : > { %362 = vmatpush.msra.mxu1 %v719_v2 }
  0x37   : > { %384 = vmatpush.msra.mxu2 %v716_v1  ;;  %v280_v1 = vadd.s32 4294967264, %v807_v53 }
  0x38   : > { %385 = vmatmul.f32.vlgmr.msra.gmra.mxu2 %v200_v36  ;;  %363 = vmatpush.msra.mxu1 %v754_v14  ;;  %v296_v14 = vadd.s32 4294967232, %v807_v53 }
  0x3a   : > { %238 = vmax.xlane.f32.xlu0 %v237_v45  ;;  %364 = vmatpush.msra.mxu1 %v713_v0 }
  0x3b   : > { %241 = vmax.xlane.f32.xlu1 %v240_v46  ;;  %365 = vmatmul.f32.vlgmr.msra.gmra.mxu1 %v200_v36 }
  0x3c   : > { %244 = vmax.xlane.f32.xlu2 %v243_v47 }
  0x42   : > { %247 = vmax.xlane.f32.xlu0 %v246_v48 }
  0x8d   : > { %v203_v50 = vpop.xlane.xlu0 %202 }
  0x8e   : > { %v209_v51 = vpop.xlane.xlu1 %208  ;;  %v267_v58 = vperm.slane %v203_v50, %v807_v53 }
  0x8f   : > { %v215_v52 = vpop.xlane.xlu2 %214  ;;  %v273_v61 = vperm.slane %v209_v51, %v272_v55 }
  0x90   : > { %v281_v6 = vperm.slane %v215_v52, %v280_v1  ;;  %v402_v52 = vld [vmem:[%s863_s2] sm:$0xff] }
  0x91   : > { %422 = vmatpush.msra.mxu3 %v402_v52 }
  0x95   : > { %v206_v57 = vpop.xlane.xlu0 %205 }
  0x96   : > { %v269_v59 = vperm.slane %v206_v57, %v268_v54  ;;  %v212_v60 = vpop.xlane.xlu1 %211 }
  0x97   : > { %v218_v62 = vpop.xlane.xlu2 %217  ;;  %v277_v0 = vperm.slane %v212_v60, %v276_v56 }
  0x98   : > { %v271_v63 = vsel %vm270_vm0, %v269_v59, %v267_v58  ;;  %v285_v8 = vperm.slane %v218_v62, %v284_v3  ;;  %vm403_vm0 = vcmask 64512  }
  0x99   : > { %v275_v2 = vsel %vm274_vm1, %v273_v61, %v271_v63 }
  0x9a   : > { %v279_v5 = vsel %vm278_vm2, %v277_v0, %v275_v2 }
  0x9b   : > { %v283_v11 = vsel %vm282_vm3, %v281_v6, %v279_v5 }
  0x9c   : > { %v287_v15 = vsel %vm286_vm4, %v285_v8, %v283_v11 }
  0x9d   : > { %v221_v7 = vpop.xlane.xlu0 %220 }
  0x9e   : > { %v224_v10 = vpop.xlane.xlu1 %223  ;;  %v289_v12 = vperm.slane %v221_v7, %v288_v4 }
  0x9f   : > { %v227_v13 = vpop.xlane.xlu2 %226  ;;  %v293_v16 = vperm.slane %v224_v10, %v292_v9 }
  0xa0   : > { %v291_v18 = vsel %vm290_vm5, %v289_v12, %v287_v15  ;;  %v297_v19 = vperm.slane %v227_v13, %v296_v14 }
  0xa1   : > { %v295_v22 = vsel %vm294_vm6, %v293_v16, %v291_v18 }
  0xa2   : > { %v299_v27 = vsel %vm298_vm7, %v297_v19, %v295_v22 }
  0xa5   : > { %v230_v20 = vpop.xlane.xlu0 %229 }
  0xa6   : > { %v301_v23 = vperm.slane %v230_v20, %v300_v17  ;;  %v233_v24 = vpop.xlane.xlu1 %232 }
  0xa7   : > { %v236_v25 = vpop.xlane.xlu2 %235  ;;  %v305_v28 = vperm.slane %v233_v24, %v304_v21 }
  0xa8   : > { %v303_v29 = vsel %vm302_vm8, %v301_v23, %v299_v27  ;;  %v309_v31 = vperm.slane %v236_v25, %v308_v26 }
  0xa9   : > { %v307_v33 = vsel %vm306_vm9, %v305_v28, %v303_v29 }
  0xaa   : > { %v311_v38 = vsel %vm310_vm10, %v309_v31, %v307_v33 }
  0xad   : > { %v239_v34 = vpop.xlane.xlu0 %238 }
  0xae   : > { %v313_v35 = vperm.slane %v239_v34, %v312_v30  ;;  %v242_v36 = vpop.xlane.xlu1 %241 }
  0xaf   : > { %v317_v39 = vperm.slane %v242_v36, %v316_v32  ;;  %v245_v40 = vpop.xlane.xlu2 %244 }
  0xb0   : > { %v315_v41 = vsel %vm314_vm11, %v313_v35, %v311_v38  ;;  %v321_v43 = vperm.slane %v245_v40, %v320_v37 }
  0xb1   : > { %v319_v44 = vsel %vm318_vm12, %v317_v39, %v315_v41 }
  0xb2   : > { %v323_v47 = vsel %vm322_vm13, %v321_v43, %v319_v44 }
  0xb5   : > { %v248_v45 = vpop.xlane.xlu0 %247 }
  0xb6   : > { %v325_v46 = vperm.slane %v248_v45, %v324_v42 }
  0xb8   : > { %v327_v48 = vsel %vm326_vm14, %v325_v46, %v323_v47  ;;  %v366_v49 = vpop.f32.mrf.mxu1 }
  0xb9   : > { %345 = vmatmul.f32.vlgmr.msra.gmra.mxu0 %v327_v48 }
  0xbb   : > { %v386_v50 = vpop.f32.mrf.mxu2 }
  0xbc   : > { %v389_v51 = vadd.f32 %v386_v50, %v366_v49 }
  0xbe   : > { %390 = vadd.xlane.f32.xlu1 %v389_v51 }
 0x131   : > { %v391_v54 = vpop.xlane.xlu1 %390 }
 0x132   : > { %v392_v55 = vmul.f32 0.00390625, %v391_v54 }
 0x134   : > { %v394_v56 = vperm.slane %v392_v55, %v807_v53 }
 0x136   : > { %v346_v57 = vpop.f32.mrf.mxu0 }
 0x137   : > { %v397_v58 = vrot.slane %v346_v57, 7 }
 0x139   : > { %v400_v59 = vsel %vm399_vm15, %v394_v56, %v397_v58 }
 0x13a   : > { %v401_v60 = vmax.f32 %v400_v59, 0.0 }
 0x13c   : > { %525 = vmatmul.msk.f32.vlgmr.msra.gmra.mxu3 %vm403_vm0, %v401_v60 }
 0x1bf   : > { %v424_v61 = vpop.f32.mrf.mxu3 }
 0x1c0   : > { %v428_v62 = vrot.slane %v424_v61, 1 }
 0x1c2   : > { %v430_v63 = vadd.f32 %v428_v62, %v424_v61 }
 0x1c4   : > { %v526_v0 = vmul.f32 -1.442695, %v430_v63 }
 0x1c6   : > { %569 = vpow2.f32 %v526_v0 }
 0x1cc   : > { %v570_v1 = vpop.eup %569 }
 0x1cd   : > { %v434_v2 = vadd.f32 1.0, %v570_v1 }
 0x1cf   : > { %571 = vrcp.f32 %v434_v2  ;;  %v446_v5 = vand.u32 2147483648, %v434_v2  ;;  %v444_v7 = vand.u32 2147483647, %v434_v2  ;;  %vm440_vm2 = vweird.f32 %v434_v2 }
 0x1d1   : > { %v447_v9 = vor.u32 1.1754944e-38, %v446_v5  ;;  %vm445_vm4 = vcmp.eq.f32.partialorder %v444_v7, 8.507059e+37 }
 0x1d5   : > { %v572_v3 = vpop.eup %571 }
 0x1d6   : > { %v436_v53 = vmul.f32 %v572_v3, %v434_v2  ;;  %vm441_vm1 = vweird.f32 %v572_v3 }
 0x1d7   : > { %vm442_vm3 = vmor %vm440_vm2, %vm441_vm1 }
 0x1d8   : > { %v437_v4 = vsub.f32 1.0, %v436_v53 }
 0x1da   : > { %v438_v6 = vmul.f32 %v572_v3, %v437_v4 }
 0x1dc   : > { %v439_v8 = vadd.f32 %v572_v3, %v438_v6 }
 0x1de   : > { %v443_v10 = vsel %vm442_vm3, %v572_v3, %v439_v8 }
 0x1df   : > { %v448_v11 = vsel %vm445_vm4, %v447_v9, %v443_v10 }
 0x1e0   : > { %450 = vst [vmem:[%s162_s10] sm:$0x1] %v448_v11 }
 0x1e1   : > { %600 = shalt.err (!%p597_p3)
}
 0x1e2   : > { %530 = dma.vmem_to_hbm [thread:$0]  (%p695_p5), %s463_s11, 16, %s465_s17, %s452_s19  }
 0x1e3 PF: > { %p536_p4 = scmp.ge.s32.totalorder %s635_s15, 2  ;;  %s476_s29 = sand.u32 1, %s623_s12  }
 0x1e4   : > { %s477_s30 = scalar_lea.sflag [#allocation3], %s476_s29 }
 0x1e5   : > { %p533_p7 = pnand %p536_p4, %p699_p6 }
 0x1e7   : > { %p534_p8 = pneg %p533_p7 }
 0x1e9   : > { %618 = dma.done.wait (%p534_p8), %s477_s30, 16  }
 0x1ea   : > { %620 = vsyncadd (%p534_p8), %s477_s30, 4294967280  ;;  %p13_p9 = scmp.ge.s32.totalorder %s682_s18, 4   ;;  %s867_s12 = smov %s627_s13 }
 0x1eb   : > { %s868_s13 = smov %s631_s14  ;;  %s869_s14 = smov %s693_s21 }
 0x1ec   : > { %s870_s15 = smov %s682_s18  ;;  %15 = sbr.rel (!%p13_p9) target bundleno = 3 (0x3), region = 67 }
 0x1f1   :  { %482 = vsyncpa [#allocation3], 1 }
 0x1f2   :  { %484 = vsyncpa [#allocation3 + $0x1], 1 }

</bundles_post_ra>
